<compile_context>
chip_gen: v5e
topology: v5e:2x2
jax: 0.10.0
libtpu: 0.0.40
codegen_flags: <defaults>
</compile_context>

<pallas_src>
import functools

import jax
import jax.numpy as jnp
from jax.experimental import pallas as pl
from jax.experimental.pallas import tpu as pltpu


def _round_up(x, m):
    return (x + m - 1) // m * m


def _gather_chunk_kernel(perm_ref, x_hbm, o_ref, buf, sems, *, tf):
    """Gather `tf` permuted feature rows into one lane-dense (tf, Bp) output slab."""
    base = pl.program_id(0) * tf

    # Issue all row-gather DMAs for this chunk (kept in flight concurrently).
    def _start(r, carry):
        src = perm_ref[base + r]
        pltpu.make_async_copy(
            x_hbm.at[pl.ds(src, 1)], buf.at[pl.ds(r, 1)], sems.at[r]
        ).start()
        return carry

    jax.lax.fori_loop(0, tf, _start, 0)

    # Wait for all of them, then write the whole slab at once (unmasked stores).
    def _wait(r, carry):
        pltpu.make_async_copy(
            x_hbm.at[pl.ds(0, 1)], buf.at[pl.ds(r, 1)], sems.at[r]
        ).wait()
        return carry

    jax.lax.fori_loop(0, tf, _wait, 0)

    o_ref[...] = buf[...]


def permutation_forward(inputs, permutation, *, tf=128):
    """Equivalent of Permutation(permutation, dim=1).forward(inputs).

    inputs:      (B, F) float array
    permutation: (F,)   integer array (a permutation of range(F))
    returns:     (outputs (B, F), logabsdet (B,))
    """
    B, F = inputs.shape
    assert permutation.shape == (F,)
    perm = permutation.astype(jnp.int32)

    # Feature-major slab; pad the batch (lane) axis to a multiple of 128.
    x_t = inputs.T  # (F, B)
    bp = _round_up(max(B, 1), 128)
    if bp != B:
        x_t = jnp.pad(x_t, ((0, 0), (0, bp - B)))

    # Chunk size: multiple of 8 sublanes, capped so the scratch + double-buffered
    # output tiles stay well under the scoped-VMEM limit on every generation.
    itemsize = jnp.dtype(inputs.dtype).itemsize
    vmem_cap_rows = max(8, ((4 * 1024 * 1024) // (bp * itemsize)) // 8 * 8)
    tf = min(_round_up(max(tf, 8), 8), _round_up(F, 8), vmem_cap_rows)

    # Pad the permutation so F is a multiple of the chunk size (padded entries
    # read row 0, which is always valid; the padded output rows are sliced off).
    fp = _round_up(F, tf)
    if fp != F:
        perm = jnp.pad(perm, (0, fp - F))
    num_chunks = fp // tf

    grid_spec = pltpu.PrefetchScalarGridSpec(
        num_scalar_prefetch=1,  # permutation lands in SMEM
        grid=(num_chunks,),
        in_specs=[
            # x_t stays in HBM; rows are gathered with manual DMAs in the kernel.
            pl.BlockSpec(memory_space=pl.ANY),
        ],
        out_specs=pl.BlockSpec((tf, bp), lambda c, _perm: (c, 0)),
        scratch_shapes=[
            pltpu.VMEM((tf, bp), inputs.dtype),
            pltpu.SemaphoreType.DMA((tf,)),
        ],
    )

    out_t = pl.pallas_call(
        functools.partial(_gather_chunk_kernel, tf=tf),
        grid_spec=grid_spec,
        out_shape=jax.ShapeDtypeStruct((fp, bp), inputs.dtype),
        compiler_params=pltpu.CompilerParams(
            dimension_semantics=("parallel",),
            vmem_limit_bytes=32 * 1024 * 1024,
        ),
    )(perm, x_t)

    outputs = out_t[:F, :B].T                         # back to (B, F)
    logabsdet = jnp.zeros((B,), dtype=inputs.dtype)   # |det J| = 1 for a permutation
    return outputs, logabsdet


if __name__ == "__main__":
    key = jax.random.PRNGKey(0)
    k_x, k_p = jax.random.split(key)

    # Small shapes; tf=16 forces 4 grid chunks so the chunked-gather path is exercised.
    B, F = 8, 64
    x = jax.random.normal(k_x, (B, F), dtype=jnp.float32)
    perm = jax.random.permutation(k_p, F).astype(jnp.int32)

    outputs, logabsdet = permutation_forward(x, perm, tf=16)
    outputs = jax.block_until_ready(outputs)
    logabsdet = jax.block_until_ready(logabsdet)

    ref_out = jnp.take(x, perm, axis=1)   # torch.index_select(inputs, 1, permutation)
    ref_ld = jnp.zeros((B,), dtype=x.dtype)

    assert outputs.shape == (B, F) and outputs.dtype == x.dtype
    assert logabsdet.shape == (B,) and logabsdet.dtype == x.dtype
    assert jnp.array_equal(outputs, ref_out)
    assert jnp.array_equal(logabsdet, ref_ld)

    # Also exercise a feature count that is not a multiple of the chunk size.
    B2, F2 = 4, 12
    x2 = jax.random.normal(k_x, (B2, F2), dtype=jnp.float32)
    perm2 = jax.random.permutation(k_p, F2).astype(jnp.int32)
    out2, ld2 = permutation_forward(x2, perm2)
    out2 = jax.block_until_ready(out2)
    assert jnp.array_equal(out2, jnp.take(x2, perm2, axis=1))
    assert jnp.array_equal(ld2, jnp.zeros((B2,), x2.dtype))

    print("KERNEL_OK")
</pallas_src>

<mosaic_0001>
module attributes {stable_mosaic.version = 11 : i64} {
  func.func @_gather_chunk_kernel(%arg0: i32, %arg1: memref<64xi32, #tpu.memory_space<smem>>, %arg2: memref<64x128xf32, #tpu.memory_space<any>>, %arg3: memref<16x128xf32, #tpu.memory_space<vmem>>, %arg4: memref<16x128xf32, #tpu.memory_space<vmem>>, %arg5: memref<16x!tpu.dma_semaphore, #tpu.memory_space<semaphore_mem>>) attributes {dimension_semantics = [#tpu.dimension_semantics<parallel>], iteration_bounds = array<i64: 4>, scalar_prefetch = 1 : i64, scratch_operands = 2 : i64, tpu.core_type = #tpu.core_type<tc>, window_params = [{}, {transform_indices = @transform_1, window_bounds = array<i64: 16, 128>}]} {
    %c16_i32 = arith.constant 16 : i32
    %0 = arith.muli %arg0, %c16_i32 : i32
    %c0_i32 = arith.constant 0 : i32
    %c16_i32_0 = arith.constant 16 : i32
    %1 = arith.addi %c0_i32, %c16_i32_0 : i32
    %c1_i32 = arith.constant 1 : i32
    scf.for %arg6 = %c0_i32 to %1 step %c1_i32  : i32 {
      %5 = arith.addi %0, %arg6 : i32
      %6 = arith.index_cast %5 : i32 to index
      %7 = memref.load %arg1[%6] : memref<64xi32, #tpu.memory_space<smem>>
      %c0_i32_9 = arith.constant 0 : i32
      %8 = tpu.memref_slice %arg2[%7, %c0_i32_9] : memref<64x128xf32, #tpu.memory_space<any>> -> memref<1x128xf32, #tpu.memory_space<any>>
      %c0_i32_10 = arith.constant 0 : i32
      %9 = tpu.memref_slice %arg4[%arg6, %c0_i32_10] : memref<16x128xf32, #tpu.memory_space<vmem>> -> memref<1x128xf32, #tpu.memory_space<vmem>>
      %10 = tpu.memref_slice %arg5[%arg6] : memref<16x!tpu.dma_semaphore, #tpu.memory_space<semaphore_mem>> -> memref<1x!tpu.dma_semaphore, #tpu.memory_space<semaphore_mem>>
      %11 = tpu.memref_squeeze %10 : memref<1x!tpu.dma_semaphore, #tpu.memory_space<semaphore_mem>> -> memref<!tpu.dma_semaphore, #tpu.memory_space<semaphore_mem>>
      tpu.enqueue_dma source(%8 : memref<1x128xf32, #tpu.memory_space<any>>) target(%9 : memref<1x128xf32, #tpu.memory_space<vmem>>) target_semaphore(%11 : memref<!tpu.dma_semaphore, #tpu.memory_space<semaphore_mem>>)
    }
    %c16_i32_1 = arith.constant 16 : i32
    %c0_i32_2 = arith.constant 0 : i32
    %c16_i32_3 = arith.constant 16 : i32
    %2 = arith.addi %c0_i32_2, %c16_i32_3 : i32
    %c1_i32_4 = arith.constant 1 : i32
    scf.for %arg6 = %c0_i32_2 to %2 step %c1_i32_4  : i32 {
      %c0_i32_9 = arith.constant 0 : i32
      %c0_i32_10 = arith.constant 0 : i32
      %5 = tpu.memref_slice %arg2[%c0_i32_9, %c0_i32_10] : memref<64x128xf32, #tpu.memory_space<any>> -> memref<1x128xf32, #tpu.memory_space<any>>
      %c0_i32_11 = arith.constant 0 : i32
      %6 = tpu.memref_slice %arg4[%arg6, %c0_i32_11] : memref<16x128xf32, #tpu.memory_space<vmem>> -> memref<1x128xf32, #tpu.memory_space<vmem>>
      %7 = tpu.memref_slice %arg5[%arg6] : memref<16x!tpu.dma_semaphore, #tpu.memory_space<semaphore_mem>> -> memref<1x!tpu.dma_semaphore, #tpu.memory_space<semaphore_mem>>
      %8 = tpu.memref_squeeze %7 : memref<1x!tpu.dma_semaphore, #tpu.memory_space<semaphore_mem>> -> memref<!tpu.dma_semaphore, #tpu.memory_space<semaphore_mem>>
      tpu.wait_dma2 semaphore(%8 : memref<!tpu.dma_semaphore, #tpu.memory_space<semaphore_mem>>) src(%5 : memref<1x128xf32, #tpu.memory_space<any>>) dst(%6 : memref<1x128xf32, #tpu.memory_space<vmem>>)
    }
    %c16_i32_5 = arith.constant 16 : i32
    %c0 = arith.constant 0 : index
    %c0_6 = arith.constant 0 : index
    %3 = vector.load %arg4[%c0, %c0_6] : memref<16x128xf32, #tpu.memory_space<vmem>>, vector<16x128xf32>
    %c0_7 = arith.constant 0 : index
    %c0_8 = arith.constant 0 : index
    %4 = vector.load %arg3[%c0_7, %c0_8] : memref<16x128xf32, #tpu.memory_space<vmem>>, vector<16x128xf32>
    tpu.vector_store %arg3[%c0_7, %c0_8], %3 {strides = array<i32>} : memref<16x128xf32, #tpu.memory_space<vmem>>, vector<16x128xf32>,
    return
  }
  func.func @transform_1(%arg0: i32, %arg1: memref<64xi32, #tpu.memory_space<smem>>) -> (i32, i32) {
    %c0_i32 = arith.constant 0 : i32
    %c0_i32_0 = arith.constant 0 : i32
    return %arg0, %c0_i32 : i32, i32
  }
}

</mosaic_0001>

<bundles_post_ra>
// kernel: tpu_custom_call.1
= control target key start
LH: loop header
LB: loop body
LE: loop exit
PB: predicated region body
PF: predicated region fallthrough
CT: control target
= control target key end

     0   :  { %s472_s12 = smov [#allocation5]   ;;  %s596_s0 = inlined_call_operand.hbm [shape: s32[64], index: 0, kind: input, shape index: {}]   ;;  %s597_s1 = inlined_call_operand.hbm [shape: f32[64,128], index: 1, kind: input, shape index: {}]   ;;  %s598_s2 = inlined_call_operand.hbm [shape: f32[64,128], index: 2, kind: output, shape index: {}]  }
   0x1   :  { %s8_s11 = sshll.u32 %s596_s0, 4  ;;  %s9_s11 = int_to_ptr.hbm [resolvable:$true] %s8_s11 }
   0x2   :  { %11 = dma.hbm_to_smem %s9_s11, 16, %s472_s12, [#allocation4] }
   0x3   :  { %444 = dma.done.wait [#allocation4], 16 }
   0x4   :  { %445 = vsyncadd [#allocation4], 4294967280 }
   0x5   :  { %14 = sfence }
   0x6   :  { %15 = vsyncpa [#allocation7], 0 }
   0x7   :  { %17 = vsyncpa [#allocation7 + $0x1], 0  ;;  %s494_s13 = smov 0   ;;  %s496_s14 = smov 0  }
   0x8   :  { %s498_s15 = smov 0  }
   0x9 LB: > { %s283_s0 = sadd.s32 4294967295, %s462_s15   ;;  %s511_s16 = sadd.s32 1, %s462_s15   ;;  %s462_s15 = sphi %s498_s15, %s603_s15   ;;  %s458_s14 = sphi %s496_s14, %s602_s14   ;;  %s454_s13 = sphi %s494_s13, %s601_s13  }
   0xa   : > { %s26_s17 = ssub.s32 %s462_s15, %s511_s16  ;;  %s29_s18 = sadd.s32 1, %s458_s14 }
   0xb   : > { %p27_p0 = scmp.eq.s32.totalorder %s26_s17, 0  ;;  %p284_p1 = scmp.ne.s32.totalorder %s26_s17, 0 }
   0xc   : > { %p33_p2 = scmp.eq.s32.totalorder %s462_s15, 3  ;;  %p38_p3 = scmp.ne.s32.totalorder %s458_s14, %s454_s13 }
   0xd   : > { %s520_s19 = scalar_select %p27_p0, %s458_s14, %s29_s18  }
   0xe   : > { %p522_p4 = por %p284_p1, %p33_p2  ;;  %p39_p5 = scmp.eq.s32.totalorder %s283_s0, 3 }
   0xf   : > { %p285_p7 = scmp.ge.s32.totalorder %s462_s15, 4 }
  0x10   : > { %p526_p6 = por %p39_p5, %p38_p3  ;;  %s53_s22 = sand.u32 (!%p285_p7), 1, %s458_s14  }
  0x11   : > { %48 = sbr.rel (%p285_p7) target bundleno = 78 (0x4e), region = 12  ;;  %s287_s23 = sshll.u32 (!%p285_p7), %s462_s15, 4 }
  0x12   : > { %s286_s24 = sshll.u32 (!%p285_p7), %s53_s22, 4  ;;  %s537_s26 = smov (!%p285_p7), 0  }
  0x13   : > { %s535_s25 = scalar_lea.vmem (!%p285_p7), [#allocation6], %s286_s24 }
  0x16 LB: >> { %s64_s27 = sadd.s32 %s466_s26, %s287_s23  ;;  %s67_s29 = scalar_lea.vmem [#allocation2], %s466_s26  ;;  %s466_s26 = sphi %s537_s26, %s63_s26  }
  0x17   : >> { %s65_s28 = sld [smem:[#allocation5 + %s64_s27]]  ;;  %s546_s30 = sshll.u32 %s67_s29, 4  ;;  %s79_s30 = int_to_ptr.vmem [resolvable:$true] %s546_s30 }
  0x18   : >> { %s68_s7 = scalar_lea.sflag [#allocation3], %s466_s26  ;;  %s376_s12 = scalar_lea.hbm %s597_s1, 64 }
  0x1d   : >> { %s66_s5 = scalar_lea.hbm %s597_s1, %s65_s28 }
  0x1e   : >> { %s76_s6 = sshll.u32 %s66_s5, 4  ;;  %s77_s6 = int_to_ptr.hbm [resolvable:$true] %s76_s6 }
  0x1f   : >> { %s372_s8 = sshra.s32 %s77_s6, 4  ;;  %s373_s8 = int_to_ptr.hbm [resolvable:$true] %s372_s8 }
  0x20   : >> { %s374_s9 = scalar_lea.hbm %s373_s8, 1  ;;  %p377_p9 = scmp.lt.s32.totalorder %s373_s8, %s597_s1 }
  0x21   : >> { %p375_p8 = scmp.ne.s32.totalorder %s373_s8, %s374_s9  ;;  %p378_p10 = scmp.lt.s32.totalorder %s376_s12, %s374_s9 }
  0x23   : >> { %p379_p11 = por %p378_p10, %p377_p9 }
  0x25   : >> { %p380_p12 = pnand %p379_p11, %p375_p8 }
  0x27   : >> { %383 = shalt.err (!%p380_p12)  }
  0x28   : >> { %s384_s18 = sshra.s32 %s79_s30, 4  ;;  %s473_s27 = smov [#allocation2]   ;;  %s385_s18 = int_to_ptr.vmem [resolvable:$true] %s384_s18 }
  0x29   : >> { %s386_s24 = scalar_lea.vmem %s385_s18, 1  ;;  %s388_s28 = scalar_lea.vmem %s473_s27, 16 }
  0x2a   : >> { %p387_p13 = scmp.ne.s32.totalorder %s385_s18, %s386_s24  ;;  %p389_p0 = scmp.lt.s32.totalorder %s385_s18, [#allocation2] }
  0x2b   : >> { %p390_p1 = scmp.lt.s32.totalorder %s388_s28, %s386_s24 }
  0x2d   : >> { %p391_p2 = por %p390_p1, %p389_p0 }
  0x2f   : >> { %p392_p3 = pnand %p391_p2, %p387_p13 }
  0x31   : >> { %395 = shalt.err (!%p392_p3)  }
  0x32   : >> { %81 = dma.hbm_to_vmem [thread:$0]  %s77_s6, 16, %s79_s30, %s68_s7 }
  0x33   : >> { %s63_s26 = sadd.s32 1, %s466_s26  }
  0x34   : >> { %p60_p5 = scmp.ge.s32.totalorder %s63_s26, 16  }
  0x35   : > { %s468_s29 = smov (%p60_p5), 0  }
  0x36   : > { %62 = sbr.rel (!%p60_p5) target bundleno = 22 (0x16), region = 81 }
  0x3b LB: >> { %s88_s3 = scalar_lea.sflag [#allocation3], %s470_s29  ;;  %s470_s29 = sphi %s468_s29, %s87_s29  }
  0x3c   : >> { %446 = dma.done.wait %s88_s3, 16 }
  0x3d   : >> { %447 = vsyncadd %s88_s3, 4294967280  ;;  %s87_s29 = sadd.s32 1, %s470_s29  }
  0x3e   : >> { %p84_p7 = scmp.ge.s32.totalorder %s87_s29, 16  }
  0x3f   : > { %v92_v0 = vld [vmem:[#allocation2] sm:$0xff] (%p84_p7)  ;;  %v93_v1 = vld [vmem:[#allocation2 + $0x8] sm:$0xff] (%p84_p7)  ;;  %s108_s4 = scalar_lea.hbm (%p84_p7), %s598_s2, %s287_s23  ;;  %s109_s5 = sshll.u32 (%p84_p7), %s535_s25, 4  ;;  %s110_s5 = int_to_ptr.vmem [resolvable:$true] %s109_s5 }
  0x40   : > { %86 = sbr.rel (!%p84_p7) target bundleno = 59 (0x3b), region = 92  ;;  %94 = vst [vmem:[%s535_s25] sm:$0xff] (%p84_p7), %v92_v0  ;;  %s111_s6 = sshll.u32 (%p84_p7), %s108_s4, 4  ;;  %s112_s6 = int_to_ptr.hbm [resolvable:$true] %s111_s6 }
  0x41   : > { %95 = vst [vmem:[%s535_s25 + $0x8] sm:$0xff] (%p84_p7), %v93_v1  ;;  %s97_s7 = scalar_lea.sflag (%p84_p7), [#allocation7], %s53_s22  ;;  %s410_s8 = sshra.s32 (%p84_p7), %s112_s6, 4  ;;  %s411_s8 = int_to_ptr.hbm [resolvable:$true] %s410_s8 }
  0x42   : > { %s412_s9 = scalar_lea.hbm (%p84_p7), %s411_s8, 16  ;;  %s416_s12 = scalar_lea.hbm (%p84_p7), %s598_s2, 64 }
  0x43   : > { %p413_p8 = scmp.ne.s32.totalorder (%p84_p7), %s411_s8, %s412_s9  ;;  %p417_p11 = scmp.lt.s32.totalorder (%p84_p7), %s411_s8, %s598_s2 }
  0x44   : > { %p418_p12 = scmp.lt.s32.totalorder (%p84_p7), %s416_s12, %s412_s9 }
  0x45   : > { %p414_p9 = pnand %p413_p8, %p522_p4 }
  0x46   : > { %p419_p13 = por %p418_p12, %p417_p11 }
  0x47   : > { %p415_p10 = pneg %p414_p9 }
  0x49   : > { %p420_p0 = pnand %p419_p13, %p415_p10 }
  0x4b   : > { %423 = shalt.err (!%p420_p0)
}
  0x4c   : > { %s474_s22 = smov 128   ;;  %s475_s25 = smov 8  }
  0x4d   : > { %310 = dma.vmem_to_hbm [thread:$0]  (%p522_p4), %s110_s5, 256, %s112_s6, %s97_s7, %s474_s22, %s474_s22, %s475_s25  }
  0x4e PF: > { %p316_p1 = scmp.ge.s32.totalorder %s462_s15, 1  ;;  %s126_s17 = sand.u32 1, %s454_s13  }
  0x4f   : > { %s127_s18 = scalar_lea.sflag [#allocation7], %s126_s17 }
  0x50   : > { %p313_p2 = pnand %p316_p1, %p526_p6 }
  0x52   : > { %p314_p3 = pneg %p313_p2 }
  0x54   : > { %449 = dma.done.wait (%p314_p3), %s127_s18, 256  }
  0x55   : > { %451 = vsyncadd (%p314_p3), %s127_s18, 4294967040  ;;  %p20_p5 = scmp.ge.s32.totalorder %s511_s16, 5   ;;  %s601_s13 = smov %s458_s14 }
  0x56   : > { %s602_s14 = smov %s520_s19  ;;  %s603_s15 = smov %s511_s16 }
  0x57   :  { %22 = sbr.rel (!%p20_p5) target bundleno = 9 (0x9), region = 103 }
  0x5c   :  { %133 = vsyncpa [#allocation7], 1 }
  0x5d   :  { %135 = vsyncpa [#allocation7 + $0x1], 1 }
  0x5e   :  { %136 = vsyncmov [#allocation3] }
  0x61   :  { %s137_s15 = vpop.sfrf %136 }
  0x62   :  { %p293_p4 = scmp.ne.s32.totalorder %s137_s15, 0 }
  0x64   :  { %141 = shalt.err (%p293_p4)  }
  0x65   :  { %143 = vsyncmov [#allocation3 + $0x1] }
  0x68   :  { %s144_s20 = vpop.sfrf %143 }
  0x69   :  { %p294_p6 = scmp.ne.s32.totalorder %s144_s20, 0 }
  0x6b   :  { %148 = shalt.err (%p294_p6)  }
  0x6c   :  { %150 = vsyncmov [#allocation3 + $0x2] }
  0x6f   :  { %s151_s21 = vpop.sfrf %150 }
  0x70   :  { %p295_p7 = scmp.ne.s32.totalorder %s151_s21, 0 }
  0x72   :  { %155 = shalt.err (%p295_p7)  }
  0x73   :  { %157 = vsyncmov [#allocation3 + $0x3] }
  0x76   :  { %s158_s24 = vpop.sfrf %157 }
  0x77   :  { %p296_p8 = scmp.ne.s32.totalorder %s158_s24, 0 }
  0x79   :  { %162 = shalt.err (%p296_p8)  }
  0x7a   :  { %164 = vsyncmov [#allocation3 + $0x4] }
  0x7d   :  { %s165_s16 = vpop.sfrf %164 }
  0x7e   :  { %p297_p9 = scmp.ne.s32.totalorder %s165_s16, 0 }
  0x80   :  { %169 = shalt.err (%p297_p9)  }
  0x81   :  { %171 = vsyncmov [#allocation3 + $0x5] }
  0x84   :  { %s172_s1 = vpop.sfrf %171 }
  0x85   :  { %p298_p10 = scmp.ne.s32.totalorder %s172_s1, 0 }
  0x87   :  { %176 = shalt.err (%p298_p10)  }
  0x88   :  { %178 = vsyncmov [#allocation3 + $0x6] }
  0x8b   :  { %s179_s2 = vpop.sfrf %178 }
  0x8c   :  { %p299_p11 = scmp.ne.s32.totalorder %s179_s2, 0 }
  0x8e   :  { %183 = shalt.err (%p299_p11)  }
  0x8f   :  { %185 = vsyncmov [#allocation3 + $0x7] }
  0x92   :  { %s186_s13 = vpop.sfrf %185 }
  0x93   :  { %p300_p12 = scmp.ne.s32.totalorder %s186_s13, 0 }
  0x95   :  { %190 = shalt.err (%p300_p12)  }
  0x96   :  { %192 = vsyncmov [#allocation3 + $0x8] }
  0x99   :  { %s193_s14 = vpop.sfrf %192 }
  0x9a   :  { %p301_p13 = scmp.ne.s32.totalorder %s193_s14, 0 }
  0x9c   :  { %197 = shalt.err (%p301_p13)  }
  0x9d   :  { %199 = vsyncmov [#allocation3 + $0x9] }
  0xa0   :  { %s200_s19 = vpop.sfrf %199 }
  0xa1   :  { %p302_p0 = scmp.ne.s32.totalorder %s200_s19, 0 }
  0xa3   :  { %204 = shalt.err (%p302_p0)  }
  0xa4   :  { %206 = vsyncmov [#allocation3 + $0xa] }
  0xa7   :  { %s207_s27 = vpop.sfrf %206 }
  0xa8   :  { %p303_p1 = scmp.ne.s32.totalorder %s207_s27, 0 }
  0xaa   :  { %211 = shalt.err (%p303_p1)  }
  0xab   :  { %213 = vsyncmov [#allocation3 + $0xb] }
  0xae   :  { %s214_s28 = vpop.sfrf %213 }
  0xaf   :  { %p304_p2 = scmp.ne.s32.totalorder %s214_s28, 0 }
  0xb1   :  { %218 = shalt.err (%p304_p2)  }
  0xb2   :  { %220 = vsyncmov [#allocation3 + $0xc] }
  0xb5   :  { %s221_s29 = vpop.sfrf %220 }
  0xb6   :  { %p305_p3 = scmp.ne.s32.totalorder %s221_s29, 0 }
  0xb8   :  { %225 = shalt.err (%p305_p3)  }
  0xb9   :  { %227 = vsyncmov [#allocation3 + $0xd] }
  0xbc   :  { %s228_s3 = vpop.sfrf %227 }
  0xbd   :  { %p306_p5 = scmp.ne.s32.totalorder %s228_s3, 0 }
  0xbf   :  { %232 = shalt.err (%p306_p5)  }
  0xc0   :  { %234 = vsyncmov [#allocation3 + $0xe] }
  0xc3   :  { %s235_s26 = vpop.sfrf %234 }
  0xc4   :  { %p307_p4 = scmp.ne.s32.totalorder %s235_s26, 0 }
  0xc6   :  { %239 = shalt.err (%p307_p4)  }
  0xc7   :  { %241 = vsyncmov [#allocation3 + $0xf] }
  0xca   :  { %s242_s30 = vpop.sfrf %241 }
  0xcb   :  { %p308_p6 = scmp.ne.s32.totalorder %s242_s30, 0 }
  0xcd   :  { %246 = shalt.err (%p308_p6)  }

</bundles_post_ra>
